<compile_context>
chip_gen: v7x
topology: tpu7x:2x2x1
jax: 0.10.0
libtpu: 0.0.40
codegen_flags: <defaults>
</compile_context>

<pallas_src>
import functools

import jax
import jax.numpy as jnp
from jax import lax
from jax.experimental import pallas as pl
from jax.experimental.pallas import tpu as pltpu


def _round_up(x, m):
    return ((x + m - 1) // m) * m


def gru_seq_kernel(gi_ref, h0_ref, whh_ref, bhn_ref, y_ref, h_scratch):
    """One grid step == one block of Tb GRU time steps over the (padded) batch.

    gi_ref  : VMEM (Tb, Bp, 3*Hp) f32   precomputed x@W_ih^T + fused biases
    h0_ref  : VMEM (Bp, Hp) f32         padded initial hidden (resident)
    whh_ref : VMEM (Hp, 3*Hp) bf16      gate-padded W_hh^T (resident)
    bhn_ref : VMEM (1, Hp) f32          b_hh_n (scaled by r inside the cell)
    y_ref   : VMEM (Tb, Bp, Hp) f32     per-step outputs (y_t == new hidden)
    h_scratch : VMEM (Bp, Hp) f32       hidden state carried across grid steps
    """
    @pl.when(pl.program_id(0) == 0)
    def _init():
        h_scratch[...] = h0_ref[...]          # padding lanes/rows are already 0

    t_block = gi_ref.shape[0]
    hp = h_scratch.shape[1]
    whh = whh_ref[...]                        # bf16, resident
    bhn = bhn_ref[...]                        # (1, Hp)

    def step(t, carry):
        h = h_scratch[...]                    # (Bp, Hp) f32
        gi = gi_ref[t]                        # (Bp, 3Hp) f32
        # Single small serial matmul per step (bf16 MXU, f32 accumulate).
        gh = jnp.dot(h.astype(whh.dtype), whh,
                     preferred_element_type=jnp.float32)
        # Gate slices start on 128-lane boundaries (Hp is a multiple of 128).
        r = jax.nn.sigmoid(gi[:, 0:hp] + gh[:, 0:hp])
        z = jax.nn.sigmoid(gi[:, hp:2 * hp] + gh[:, hp:2 * hp])
        n = jnp.tanh(gi[:, 2 * hp:3 * hp] + r * (gh[:, 2 * hp:3 * hp] + bhn))
        h_new = (1.0 - z) * n + z * h
        h_scratch[...] = h_new                # carry to next step
        y_ref[t] = h_new.astype(y_ref.dtype)  # lane-dense (Bp, Hp) slab store
        return carry

    lax.fori_loop(0, t_block, step, 0, unroll=True)


@jax.jit
def gru_encode(token_ids, h0, emb, wih_t_pad, bias_i, whh_t_pad, b_hn):
    """token_ids: (T, B) int32; h0: (B, H). Returns y: (T, B, H) float32."""
    T, B = token_ids.shape
    H = h0.shape[1]
    Bp = _round_up(max(B, 1), 8)               # sublane tile
    Hp = b_hn.shape[1]                         # lane-padded hidden size

    # ---- hoisted, non-recurrent work (one big matmul over all T steps) ----
    x = jnp.take(emb, token_ids.astype(jnp.int32), axis=0)          # (T, B, E)
    gi = jnp.einsum("tbe,eg->tbg", x, wih_t_pad,
                    preferred_element_type=jnp.float32) + bias_i    # (T, B, 3Hp)

    # Block the time axis to amortize per-grid-step overhead.
    t_block = min(32, T)
    T_pad = _round_up(T, t_block)

    gi_pad = jnp.zeros((T_pad, Bp, 3 * Hp), jnp.float32).at[:T, :B].set(gi)
    h0_pad = jnp.zeros((Bp, Hp), jnp.float32).at[:B, :H].set(h0)

    grid_spec = pltpu.PrefetchScalarGridSpec(
        num_scalar_prefetch=0,
        grid=(T_pad // t_block,),
        in_specs=[
            pl.BlockSpec((t_block, Bp, 3 * Hp), lambda t: (t, 0, 0)),  # gi stream
            pl.BlockSpec((Bp, Hp), lambda t: (0, 0)),                  # h0 (resident)
            pl.BlockSpec(whh_t_pad.shape, lambda t: (0, 0)),           # W_hh^T (resident)
            pl.BlockSpec(b_hn.shape, lambda t: (0, 0)),                # b_hh_n
        ],
        out_specs=pl.BlockSpec((t_block, Bp, Hp), lambda t: (t, 0, 0)),
        scratch_shapes=[pltpu.VMEM((Bp, Hp), jnp.float32)],            # carried h
    )

    y_pad = pl.pallas_call(
        gru_seq_kernel,
        grid_spec=grid_spec,
        out_shape=jax.ShapeDtypeStruct((T_pad, Bp, Hp), jnp.float32),
        compiler_params=pltpu.CompilerParams(
            dimension_semantics=("arbitrary",),       # sequential carry over time
            vmem_limit_bytes=32 * 1024 * 1024),
    )(gi_pad, h0_pad, whh_t_pad, b_hn)

    return y_pad[:T, :B, :H]


def gru_ref_step(x, h, w_ih, w_hh, b_ih, b_hh):
    """Pure-JAX reference GRU cell (PyTorch semantics), unpadded params."""
    H = h.shape[-1]
    gi = x @ w_ih.T + b_ih
    gh = h @ w_hh.T + b_hh
    r = jax.nn.sigmoid(gi[:, :H] + gh[:, :H])
    z = jax.nn.sigmoid(gi[:, H:2 * H] + gh[:, H:2 * H])
    n = jnp.tanh(gi[:, 2 * H:] + r * gh[:, 2 * H:])
    return (1.0 - z) * n + z * h


class EncoderRNNPallas:
    """JAX/Pallas equivalent of EncoderRNN with cell_type='GRU',
    num_layers_encoder=1, bi_directional=False, drop_out=0.0 (eval mode)."""

    def __init__(self, input_size, embedding_size, hidden_size, key):
        self.emb_n = embedding_size
        self.hid_n = hidden_size
        H = hidden_size
        Hp = _round_up(H, 128)                  # each gate starts on a 128-lane boundary
        self.hid_pad = Hp

        k_emb, k_wih, k_whh, k_bih, k_bhh = jax.random.split(key, 5)
        # nn.Embedding default init: N(0, 1)
        self.embedding = jax.random.normal(
            k_emb, (input_size, embedding_size), jnp.float32)
        # nn.GRU default init: U(-1/sqrt(H), 1/sqrt(H)); layout [r|z|n] along 3H.
        bound = 1.0 / (hidden_size ** 0.5)
        self.w_ih = jax.random.uniform(
            k_wih, (3 * H, embedding_size), jnp.float32, -bound, bound)
        self.w_hh = jax.random.uniform(
            k_whh, (3 * H, H), jnp.float32, -bound, bound)
        self.b_ih = jax.random.uniform(k_bih, (3 * H,), jnp.float32, -bound, bound)
        self.b_hh = jax.random.uniform(k_bhh, (3 * H,), jnp.float32, -bound, bound)

        # ---- one-time kernel-layout params (no per-forward transpose/reshape) ----
        def pad_cols(m, w):      # (rows, H) -> (rows, w)
            return jnp.pad(m, ((0, 0), (0, w - m.shape[1])))

        def pad_vec(v, w):
            return jnp.pad(v, (0, w - v.shape[0]))

        wih_t = self.w_ih.T                      # (E, 3H)
        whh_t = self.w_hh.T                      # (H, 3H)
        wr, wz, wn = jnp.split(wih_t, 3, axis=1)
        vr, vz, vn = jnp.split(whh_t, 3, axis=1)
        # W_ih^T stays outside the kernel (used in the hoisted XLA projection).
        self.wih_t_pad = jnp.concatenate(
            [pad_cols(wr, Hp), pad_cols(wz, Hp), pad_cols(wn, Hp)], axis=1)   # (E, 3Hp)
        # W_hh^T lives in the kernel -> bf16 (native MXU path, half the VMEM).
        self.whh_t_pad = jnp.concatenate(
            [jnp.pad(v, ((0, Hp - H), (0, Hp - H))) for v in (vr, vz, vn)],
            axis=1).astype(jnp.bfloat16)                                      # (Hp, 3Hp)

        bir, biz, bin_ = jnp.split(self.b_ih, 3)
        bhr, bhz, bhn = jnp.split(self.b_hh, 3)
        # r/z biases pre-added; b_ih_n goes with gi, b_hh_n stays separate (scaled by r).
        self.bias_i = jnp.concatenate(
            [pad_vec(bir + bhr, Hp), pad_vec(biz + bhz, Hp),
             pad_vec(bin_, Hp)]).reshape(1, 3 * Hp)
        self.b_hn = pad_vec(bhn, Hp).reshape(1, Hp)

    def init_hidden(self, batch_size, num_layers_enc=1):
        return jnp.zeros((num_layers_enc, batch_size, self.hid_n), jnp.float32)

    def forward(self, token_ids, batch_size, hidden):
        """Single time step (matches EncoderRNN.forward: .view(1, batch, -1)).
        token_ids: (batch,) or (1, batch) int32; hidden: (1, batch, hid).
        Returns (y_cap: (1, batch, hid), hidden: (1, batch, hid))."""
        # dropout(p=0.0) in eval mode is the identity.
        # TODO(synk): for p > 0 training-mode dropout, apply a bernoulli mask to
        # the embedded input before the hoisted projection (pltpu PRNG in-kernel
        # is not needed since the projection is outside the recurrence).
        ids = jnp.asarray(token_ids, jnp.int32).reshape(1, batch_size)
        h0 = hidden[0]                                               # (B, H)
        y = gru_encode(ids, h0, self.embedding, self.wih_t_pad, self.bias_i,
                       self.whh_t_pad, self.b_hn)                    # (1, B, H)
        return y, y[-1:]                                             # y_cap, hidden

    def encode_sequence(self, token_ids_seq, batch_size, hidden):
        """Whole sequence in ONE pallas_call (time-blocked grid, h in VMEM).
        token_ids_seq: (T, batch) int32. Returns (y: (T,B,H), hidden: (1,B,H))."""
        ids = jnp.asarray(token_ids_seq, jnp.int32).reshape(-1, batch_size)
        h0 = hidden[0]
        y = gru_encode(ids, h0, self.embedding, self.wih_t_pad, self.bias_i,
                       self.whh_t_pad, self.b_hn)                    # (T, B, H)
        return y, y[-1:]


if __name__ == "__main__":
    vocab_size = 20
    embedding_size = 32
    hidden_size = 32
    batch_size = 2
    seq_len = 8

    key = jax.random.PRNGKey(0)
    k_params, k_tokens = jax.random.split(key)

    enc = EncoderRNNPallas(vocab_size, embedding_size, hidden_size, k_params)
    seq_ids = jax.random.randint(k_tokens, (seq_len, batch_size), 0, vocab_size,
                                 dtype=jnp.int32)
    hidden = enc.init_hidden(batch_size, 1)

    # Single-step forward (faithful to the original module's forward()).
    y_cap, hidden1 = enc.forward(seq_ids[0], batch_size, hidden)
    jax.block_until_ready((y_cap, hidden1))
    assert y_cap.shape == (1, batch_size, hidden_size)
    assert hidden1.shape == (1, batch_size, hidden_size)

    # Fused whole-sequence encode: one pallas_call, time-blocked grid.
    y_seq, hidden_T = enc.encode_sequence(seq_ids, batch_size, hidden)
    jax.block_until_ready((y_seq, hidden_T))
    assert y_seq.shape == (seq_len, batch_size, hidden_size)
    assert hidden_T.shape == (1, batch_size, hidden_size)

    # Pure-JAX reference check (loose tol: bf16 MXU passes).
    h_ref = hidden[0]
    ys = []
    for t in range(seq_len):
        x_t = jnp.take(enc.embedding, seq_ids[t], axis=0)
        h_ref = gru_ref_step(x_t, h_ref, enc.w_ih, enc.w_hh, enc.b_ih, enc.b_hh)
        ys.append(h_ref)
    y_ref = jnp.stack(ys)
    err_seq = float(jnp.max(jnp.abs(y_seq - y_ref)))
    err_one = float(jnp.max(jnp.abs(y_cap[0] - y_ref[0])))
    assert err_seq < 5e-2, f"sequence mismatch vs reference: {err_seq}"
    assert err_one < 5e-2, f"single-step mismatch vs reference: {err_one}"

    print("KERNEL_OK")
</pallas_src>

<mosaic_0001>
module attributes {stable_mosaic.version = 11 : i64} {
  func.func @gru_seq_kernel(%arg0: i32, %arg1: memref<1x8x384xf32, #tpu.memory_space<vmem>>, %arg2: memref<8x128xf32, #tpu.memory_space<vmem>>, %arg3: memref<128x384xbf16, #tpu.memory_space<vmem>>, %arg4: memref<1x128xf32, #tpu.memory_space<vmem>>, %arg5: memref<1x8x128xf32, #tpu.memory_space<vmem>>, %arg6: memref<8x128xf32, #tpu.memory_space<vmem>>) attributes {dimension_semantics = [#tpu.dimension_semantics<arbitrary>], iteration_bounds = array<i64: 1>, scalar_prefetch = 0 : i64, scratch_operands = 1 : i64, tpu.core_type = #tpu.core_type<tc>, window_params = [{transform_indices = @transform_0, window_bounds = array<i64: 1, 8, 384>}, {pipeline_mode = #tpu.pipeline_mode<synchronous>, transform_indices = @transform_1, window_bounds = array<i64: 8, 128>}, {pipeline_mode = #tpu.pipeline_mode<synchronous>, transform_indices = @transform_2, window_bounds = array<i64: 128, 384>}, {pipeline_mode = #tpu.pipeline_mode<synchronous>, transform_indices = @transform_3, window_bounds = array<i64: 1, 128>}, {transform_indices = @transform_4, window_bounds = array<i64: 1, 8, 128>}]} {
    %c0_i32 = arith.constant 0 : i32
    %0 = arith.cmpi eq, %arg0, %c0_i32 : i32
    %1 = arith.extui %0 : i1 to i32
    %c0_i32_0 = arith.constant 0 : i32
    %2 = arith.cmpi ne, %1, %c0_i32_0 : i32
    scf.if %2 {
      %c0_16 = arith.constant 0 : index
      %c0_17 = arith.constant 0 : index
      %44 = vector.load %arg2[%c0_16, %c0_17] : memref<8x128xf32, #tpu.memory_space<vmem>>, vector<8x128xf32>
      %c0_18 = arith.constant 0 : index
      %c0_19 = arith.constant 0 : index
      %45 = vector.load %arg6[%c0_18, %c0_19] : memref<8x128xf32, #tpu.memory_space<vmem>>, vector<8x128xf32>
      tpu.vector_store %arg6[%c0_18, %c0_19], %44 {strides = array<i32>} : memref<8x128xf32, #tpu.memory_space<vmem>>, vector<8x128xf32>,
    } else {
    }
    %c0 = arith.constant 0 : index
    %c0_1 = arith.constant 0 : index
    %3 = vector.load %arg3[%c0, %c0_1] : memref<128x384xbf16, #tpu.memory_space<vmem>>, vector<128x384xbf16>
    %c0_2 = arith.constant 0 : index
    %c0_3 = arith.constant 0 : index
    %4 = vector.load %arg4[%c0_2, %c0_3] : memref<1x128xf32, #tpu.memory_space<vmem>>, vector<1x128xf32>
    %c0_i32_4 = arith.constant 0 : i32
    %c0_5 = arith.constant 0 : index
    %c0_6 = arith.constant 0 : index
    %5 = vector.load %arg6[%c0_5, %c0_6] : memref<8x128xf32, #tpu.memory_space<vmem>>, vector<8x128xf32>
    %6 = arith.index_cast %c0_i32_4 : i32 to index
    %c0_7 = arith.constant 0 : index
    %c0_8 = arith.constant 0 : index
    %7 = vector.load %arg1[%6, %c0_7, %c0_8] : memref<1x8x384xf32, #tpu.memory_space<vmem>>, vector<1x8x384xf32>
    %8 = vector.shape_cast %7 : vector<1x8x384xf32> to vector<8x384xf32>
    %9 = arith.truncf %5 : vector<8x128xf32> to vector<8x128xbf16>
    %cst = arith.constant dense<0.000000e+00> : vector<8x384xf32>
    %10 = tpu.matmul %9, %3, %cst {dimension_numbers = #tpu.dot_dimension_numbers<[1], [0], [0], [1], [0, 0, 1, 1], [], []>} : vector<8x128xbf16>, vector<128x384xbf16>, vector<8x384xf32> -> vector<8x384xf32>
    %11 = vector.extract_strided_slice %8 {offsets = [0, 0], sizes = [8, 128], strides = [1, 1]} : vector<8x384xf32> to vector<8x128xf32>
    %12 = vector.extract_strided_slice %10 {offsets = [0, 0], sizes = [8, 128], strides = [1, 1]} : vector<8x384xf32> to vector<8x128xf32>
    %13 = arith.addf %11, %12 : vector<8x128xf32>
    %14 = arith.negf %13 : vector<8x128xf32>
    %15 = math.exp %14 : vector<8x128xf32>
    %cst_9 = arith.constant 1.000000e+00 : f32
    %16 = vector.broadcast %cst_9 : f32 to vector<8x128xf32>
    %17 = arith.addf %16, %15 : vector<8x128xf32>
    %18 = arith.divf %16, %17 : vector<8x128xf32>
    %19 = vector.extract_strided_slice %8 {offsets = [0, 128], sizes = [8, 128], strides = [1, 1]} : vector<8x384xf32> to vector<8x128xf32>
    %20 = vector.extract_strided_slice %10 {offsets = [0, 128], sizes = [8, 128], strides = [1, 1]} : vector<8x384xf32> to vector<8x128xf32>
    %21 = arith.addf %19, %20 : vector<8x128xf32>
    %22 = arith.negf %21 : vector<8x128xf32>
    %23 = math.exp %22 : vector<8x128xf32>
    %cst_10 = arith.constant 1.000000e+00 : f32
    %24 = vector.broadcast %cst_10 : f32 to vector<8x128xf32>
    %25 = arith.addf %24, %23 : vector<8x128xf32>
    %26 = arith.divf %24, %25 : vector<8x128xf32>
    %27 = vector.extract_strided_slice %8 {offsets = [0, 256], sizes = [8, 128], strides = [1, 1]} : vector<8x384xf32> to vector<8x128xf32>
    %28 = vector.extract_strided_slice %10 {offsets = [0, 256], sizes = [8, 128], strides = [1, 1]} : vector<8x384xf32> to vector<8x128xf32>
    %29 = vector.broadcast %4 : vector<1x128xf32> to vector<8x128xf32>
    %30 = arith.addf %28, %29 : vector<8x128xf32>
    %31 = arith.mulf %18, %30 : vector<8x128xf32>
    %32 = arith.addf %27, %31 : vector<8x128xf32>
    %33 = math.tanh %32 : vector<8x128xf32>
    %cst_11 = arith.constant 1.000000e+00 : f32
    %34 = vector.broadcast %cst_11 : f32 to vector<8x128xf32>
    %35 = arith.subf %34, %26 : vector<8x128xf32>
    %36 = arith.mulf %35, %33 : vector<8x128xf32>
    %37 = arith.mulf %26, %5 : vector<8x128xf32>
    %38 = arith.addf %36, %37 : vector<8x128xf32>
    %c0_12 = arith.constant 0 : index
    %c0_13 = arith.constant 0 : index
    %39 = vector.load %arg6[%c0_12, %c0_13] : memref<8x128xf32, #tpu.memory_space<vmem>>, vector<8x128xf32>
    tpu.vector_store %arg6[%c0_12, %c0_13], %38 {strides = array<i32>} : memref<8x128xf32, #tpu.memory_space<vmem>>, vector<8x128xf32>,
    %40 = arith.index_cast %c0_i32_4 : i32 to index
    %c0_14 = arith.constant 0 : index
    %c0_15 = arith.constant 0 : index
    %41 = vector.load %arg5[%40, %c0_14, %c0_15] : memref<1x8x128xf32, #tpu.memory_space<vmem>>, vector<1x8x128xf32>
    %42 = vector.shape_cast %41 : vector<1x8x128xf32> to vector<8x128xf32>
    %43 = vector.shape_cast %38 : vector<8x128xf32> to vector<1x8x128xf32>
    tpu.vector_store %arg5[%40, %c0_14, %c0_15], %43 {strides = array<i32>} : memref<1x8x128xf32, #tpu.memory_space<vmem>>, vector<1x8x128xf32>,
    %c1_i32 = arith.constant 1 : i32
    return
  }
  func.func @transform_0(%arg0: i32) -> (i32, i32, i32) {
    %c0_i32 = arith.constant 0 : i32
    %c0_i32_0 = arith.constant 0 : i32
    %c0_i32_1 = arith.constant 0 : i32
    return %arg0, %c0_i32, %c0_i32_0 : i32, i32, i32
  }
  func.func @transform_1(%arg0: i32) -> (i32, i32) {
    %c0_i32 = arith.constant 0 : i32
    %c0_i32_0 = arith.constant 0 : i32
    %c0_i32_1 = arith.constant 0 : i32
    return %c0_i32, %c0_i32_0 : i32, i32
  }
  func.func @transform_2(%arg0: i32) -> (i32, i32) {
    %c0_i32 = arith.constant 0 : i32
    %c0_i32_0 = arith.constant 0 : i32
    %c0_i32_1 = arith.constant 0 : i32
    return %c0_i32, %c0_i32_0 : i32, i32
  }
  func.func @transform_3(%arg0: i32) -> (i32, i32) {
    %c0_i32 = arith.constant 0 : i32
    %c0_i32_0 = arith.constant 0 : i32
    %c0_i32_1 = arith.constant 0 : i32
    return %c0_i32, %c0_i32_0 : i32, i32
  }
  func.func @transform_4(%arg0: i32) -> (i32, i32, i32) {
    %c0_i32 = arith.constant 0 : i32
    %c0_i32_0 = arith.constant 0 : i32
    %c0_i32_1 = arith.constant 0 : i32
    return %arg0, %c0_i32, %c0_i32_0 : i32, i32, i32
  }
}

</mosaic_0001>

<bundles_post_ra>
// kernel: gru_encode.1
= control target key start
LH: loop header
LB: loop body
LE: loop exit
PB: predicated region body
PF: predicated region fallthrough
CT: control target
= control target key end

     0   :  { %v406_v1 = vmov 0.0   ;;  %v407_v2 = vmov 0   ;;  %vm408_vm0 = vmmov 0   ;;  %s524_s2 = inlined_call_operand.vmem [shape: bf16[128,384], index: 2, kind: input, shape index: {}]   ;;  %s525_s1 = inlined_call_operand.vmem [shape: f32[8,128], index: 1, kind: input, shape index: {}]   ;;  %s526_s0 = inlined_call_operand.vmem [shape: f32[1,8,384], index: 0, kind: input, shape index: {}]   ;;  %s527_s3 = inlined_call_operand.vmem [shape: f32[1,128], index: 3, kind: input, shape index: {}]   ;;  %s528_s4 = inlined_call_operand.vmem [shape: f32[1,8,128], index: 4, kind: output, shape index: {}]  }
   0x1   :  { %v364_v0 = vld [vmem:[%s524_s2 + $0x4] ss:$12 sps:$4 sm:$0xff]   ;;  %341 = vmatprep.subr.bf16.mxu1 %v406_v1  ;;  %222 = vmatprep.mubr.bf16.mxu0 %v407_v2  ;;  %v366_v3 = vld [vmem:[%s524_s2] ss:$12 sps:$4 sm:$0xff]   ;;  %v367_v4 = vld [vmem:[%s524_s2 + $0x1c] ss:$12 sps:$4 sm:$0xff]  }
   0x2   :  { %357 = vmatprep.mubr.msk.bf16.mxu1 %vm408_vm0, %v406_v1  ;;  %190 = vmatprep.subr.bf16.mxu0 %v364_v0  ;;  %v369_v5 = vld [vmem:[%s524_s2 + $0x18] ss:$12 sps:$4 sm:$0xff]   ;;  %v370_v6 = vld [vmem:[%s524_s2 + $0x34] ss:$12 sps:$4 sm:$0xff]   ;;  %v372_v7 = vld [vmem:[%s524_s2 + $0x30] ss:$12 sps:$4 sm:$0xff]  }
   0x3   :  { %191 = vmatpush1.bf16.msra.mxu0 %v366_v3  ;;  %v373_v8 = vld [vmem:[%s524_s2 + $0x4c] ss:$12 sps:$4 sm:$0xff]   ;;  %v384_v9 = vld [vmem:[%s524_s2 + $0x8] ss:$12 sps:$4 sm:$0xff]   ;;  %v376_v11 = vld [vmem:[%s524_s2 + $0x64] ss:$12 sps:$4 sm:$0xff]  }
   0x4   :  { %192 = vmatprep.subr.bf16.mxu0 %v367_v4  ;;  %v375_v10 = vld [vmem:[%s524_s2 + $0x48] ss:$12 sps:$4 sm:$0xff]   ;;  %342 = vmatpush3.bf16.msra.mxu1 %v384_v9  ;;  %v388_v12 = vld [vmem:[%s524_s2 + $0x20] ss:$12 sps:$4 sm:$0xff]   ;;  %v390_v14 = vld [vmem:[%s524_s2 + $0x38] ss:$12 sps:$4 sm:$0xff]  }
   0x5   :  { %343 = vmatprep.subr.bf16.mxu1 %v406_v1  ;;  %v378_v13 = vld [vmem:[%s524_s2 + $0x60] ss:$12 sps:$4 sm:$0xff]   ;;  %v379_v15 = vld [vmem:[%s524_s2 + $0x7c] ss:$12 sps:$4 sm:$0xff]   ;;  %v381_v16 = vld [vmem:[%s524_s2 + $0x78] ss:$12 sps:$4 sm:$0xff]  }
   0x6   :  { %v391_v17 = vld [vmem:[%s524_s2 + $0x50] ss:$12 sps:$4 sm:$0xff]   ;;  %v382_v18 = vld [vmem:[%s524_s2 + $0x94] ss:$12 sps:$4 sm:$0xff]   ;;  %v386_v21 = vld [vmem:[%s524_s2 + $0xac] ss:$12 sps:$4 sm:$0xff]  }
   0x7   :  { %193 = vmatpush1.bf16.msra.mxu0 %v369_v5  ;;  %v385_v19 = vld [vmem:[%s524_s2 + $0x90] ss:$12 sps:$4 sm:$0xff]   ;;  %v392_v20 = vld [vmem:[%s524_s2 + $0x68] ss:$12 sps:$4 sm:$0xff]   ;;  %v22_v23 = vld [vmem:[%s525_s1] sm:$0xff] }
   0x8   :  { %194 = vmatprep.subr.bf16.mxu0 %v370_v6  ;;  %344 = vmatpush3.bf16.msra.mxu1 %v388_v12  ;;  %v389_v22 = vld [vmem:[%s524_s2 + $0xa8] ss:$12 sps:$4 sm:$0xff]   ;;  %v393_v24 = vld [vmem:[%s524_s2 + $0x80] ss:$12 sps:$4 sm:$0xff]   ;;  %v61_v25 = vpack.c.bf16 %v22_v23, %v22_v23  ;;  %v394_v26 = vld [vmem:[%s524_s2 + $0x98] ss:$12 sps:$4 sm:$0xff]  }
   0x9   :  { %345 = vmatprep.subr.bf16.mxu1 %v406_v1  ;;  %v395_v27 = vld [vmem:[%s524_s2 + $0xb0] ss:$12 sps:$4 sm:$0xff]   ;;  %v58_v28 = vld [vmem:[%s526_s0] sm:$0xff]  ;;  %v59_v31 = vld [vmem:[%s526_s0 + $0x8] sm:$0xff] }
   0xa   :  { %v331_v45 = vld [vmem:[%s527_s3] ss:$0 sm:$0xff]  ;;  %v60_v49 = vld [vmem:[%s526_s0 + $0x10] sm:$0xff] }
   0xb   :  { %195 = vmatpush1.bf16.msra.mxu0 %v372_v7 }
   0xc   :  { %196 = vmatprep.subr.bf16.mxu0 %v373_v8  ;;  %346 = vmatpush3.bf16.msra.mxu1 %v390_v14 }
   0xd   :  { %347 = vmatprep.subr.bf16.mxu1 %v406_v1 }
   0xf   :  { %197 = vmatpush1.bf16.msra.mxu0 %v375_v10 }
  0x10   :  { %198 = vmatprep.subr.bf16.mxu0 %v376_v11  ;;  %348 = vmatpush3.bf16.msra.mxu1 %v391_v17 }
  0x11   :  { %349 = vmatprep.subr.bf16.mxu1 %v406_v1 }
  0x13   :  { %199 = vmatpush1.bf16.msra.mxu0 %v378_v13 }
  0x14   :  { %200 = vmatprep.subr.bf16.mxu0 %v379_v15  ;;  %350 = vmatpush3.bf16.msra.mxu1 %v392_v20 }
  0x15   :  { %351 = vmatprep.subr.bf16.mxu1 %v406_v1 }
  0x17   :  { %201 = vmatpush1.bf16.msra.mxu0 %v381_v16 }
  0x18   :  { %202 = vmatprep.subr.bf16.mxu0 %v382_v18  ;;  %352 = vmatpush3.bf16.msra.mxu1 %v393_v24 }
  0x19   :  { %353 = vmatprep.subr.bf16.mxu1 %v406_v1 }
  0x1b   :  { %203 = vmatpush1.bf16.msra.mxu0 %v385_v19 }
  0x1c   :  { %204 = vmatprep.subr.bf16.mxu0 %v386_v21  ;;  %354 = vmatpush3.bf16.msra.mxu1 %v394_v26 }
  0x1d   :  { %355 = vmatprep.subr.bf16.mxu1 %v406_v1 }
  0x1f   :  { %205 = vmatpush1.bf16.msra.mxu0 %v389_v22 }
  0x20   :  { %356 = vmatpush3.bf16.msra.mxu1 %v395_v27 }
  0x22   :  { %223 = vmatmul.mubr.bf16.vlgmr.msra.gmra.mrb[0].mxu0 %v61_v25 }
  0x23   :  { %358 = vmatmul.mubr.bf16.vlgmr.msra.gmra.mrb[0].mxu1 %v61_v25 }
  0xf5   :  { %v224_v29 = vpop.f32.mrb[0].mxu0 }
  0xf6   :  { %v271_v30 = vadd.f32 %v224_v29, %v58_v28  ;;  %v226_v32 = vpop.f32.mrb[1].mxu0  ;;  %v265_v38 = vpop.f32.mrb[0].mxu1 }
  0xf7   :  { %v228_v33 = vpop.f32.mrb[2].mxu0  ;;  %v278_v36 = vadd.f32 %v226_v32, %v59_v31  ;;  %v359_v39 = vpop.f32.mrb[1].mxu1  ;;  %v291_v47 = vadd.f32 %v331_v45, %v265_v38 }
  0xf8   :  { %v329_v34 = vmul.f32 -1.442695, %v271_v30  ;;  %v229_v35 = vpop.f32.mrb[3].mxu0  ;;  %v268_v40 = vpop.f32.mrb[2].mxu1 }
  0xf9   :  { %v330_v37 = vmul.f32 -1.442695, %v278_v36  ;;  %v360_v41 = vpop.f32.mrb[3].mxu1 }
  0xfa   :  { %396 = vpow2.f32 %v329_v34 }
  0xfb   :  { %398 = vpow2.f32 %v330_v37 }
 0x104   :  { %v397_v42 = vpop.eup %396 }
 0x105   :  { %v275_v43 = vadd.f32 1.0, %v397_v42  ;;  %v399_v44 = vpop.eup %398 }
 0x106   :  { %v282_v46 = vadd.f32 1.0, %v399_v44 }
 0x107   :  { %400 = vrcp.f32 %v275_v43 }
 0x108   :  { %402 = vrcp.f32 %v282_v46 }
 0x111   :  { %v401_v48 = vpop.eup %400 }
 0x112   :  { %v292_v50 = vmul.f32 %v401_v48, %v291_v47  ;;  %v403_v52 = vpop.eup %402 }
 0x113   :  { %v295_v53 = vsub.f32 1.0, %v403_v52  ;;  %v297_v55 = vmul.f32 %v403_v52, %v22_v23 }
 0x114   :  { %v293_v51 = vadd.f32 %v292_v50, %v60_v49 }
 0x116   :  { %404 = vtanh.f32 %v293_v51 }
 0x120   :  { %v405_v54 = vpop.eup %404 }
 0x121   :  { %v296_v56 = vmul.f32 %v405_v54, %v295_v53 }
 0x123   :  { %v298_v57 = vadd.f32 %v297_v55, %v296_v56 }
 0x125   :  { %300 = vst [vmem:[%s528_s4] sm:$0xff] %v298_v57 }

</bundles_post_ra>
